<compile_context>
chip_gen: v7x
topology: tpu7x:2x2x1
jax: 0.10.0
libtpu: 0.0.40
codegen_flags: <defaults>
</compile_context>

<pallas_src>
import functools

import jax
import jax.numpy as jnp
from jax import lax
from jax.experimental import pallas as pl
from jax.experimental.pallas import tpu as pltpu

_LANES = 128
_SUB = 8
# Scoped-VMEM request: safe on every generation (v5e/v6e: 128 MiB physical,
# v7x: only 64 MiB physical -> never assume 128 MiB; cap well below it).
_VMEM_LIMIT_BYTES = 40 * 1024 * 1024
# Budget used to size the per-step row tile (double-buffered input streams
# plus rough f32 element-wise temporaries), leaving headroom below the limit.
_TILE_BUDGET_BYTES = 24 * 1024 * 1024


def _round_up(x, m):
    return (x + m - 1) // m * m


def _cdiv(a, b):
    return -(-a // b)


def _pick_rows_target(c, score_bytes, geo_bytes, mask_bytes):
    """Rows (of 128 lanes) to stream per grid step, sized to the VMEM budget."""
    per_row_stream = 2 * _LANES * (2 * score_bytes + mask_bytes + 2 * c * geo_bytes)
    per_row_temps = 4 * _LANES * (2 * c + 6)        # rough f32 temporaries
    rows = _TILE_BUDGET_BYTES // (per_row_stream + per_row_temps)
    return int(max(64, min(2048, rows // _SUB * _SUB)))


def _grid_config(b, r0, rows_target):
    """Returns (Bb, G, T, TR): batch fold, batch groups, row tiles, rows/tile."""
    if r0 <= rows_target:
        # Small per-image maps: fold whole images into one grid step.
        divisors = [d for d in range(1, b + 1) if b % d == 0]
        fit = [d for d in divisors if d * r0 <= rows_target]
        bb = max(fit)
        if bb == b and b > 1:
            # Keep at least two grid steps so both v7x TensorCores get work
            # (free on single-core chips).
            bb = max(d for d in fit if d < b)
        g, t, tr = b // bb, 1, r0
    else:
        # Large per-image maps: tile the row axis of each image.
        bb, g = 1, b
        t = _cdiv(r0, rows_target)
        tr = _round_up(_cdiv(r0, t), _SUB)
    if g * t < 2 and r0 >= 2 * _SUB:
        # Single-step grid (only reachable for B == 1): split rows anyway so
        # a v7x megacore is not left half idle.
        t = 2
        tr = _round_up(_cdiv(r0, 2), _SUB)
    return bb, g, t, tr


def _row_sum(x):
    """Sum a (..., N, 128) f32 array over everything but lanes -> (1, 128)."""
    n = x.shape[-2]
    if n % _SUB == 0:
        # Tile-aligned view; the whole reduction is VPU vreg adds, followed by
        # a single intra-vreg sublane collapse.
        y = jnp.sum(x.reshape(-1, _SUB, _LANES), axis=0)
        return jnp.sum(y, axis=0, keepdims=True)
    # Rare ragged-row path (only tiny / odd maps): stage the reduction.
    while x.ndim > 2:
        x = jnp.sum(x, axis=0)
    return jnp.sum(x, axis=0, keepdims=True)


def _east_loss_kernel(sp_ref, sg_ref, gp_ref, gg_ref, m_ref, out_ref, *,
                      r0, mask_rows, binary_mask):
    """One (batch-group, row-tile) grid step: emit five (1, 128) partial sums."""
    f32 = jnp.float32
    m = m_ref[...].astype(f32)                              # (Bb, TR, 128)
    sp = sp_ref[...].astype(f32)                            # (Bb, TR, 128)
    sg = sg_ref[...].astype(f32)                            # (Bb, TR, 128)
    d = gp_ref[...].astype(f32) - gg_ref[...].astype(f32)   # (Bb, C, TR, 128)

    if mask_rows:
        # Last row tile extends past r0: zero the out-of-bounds rows in-kernel
        # (cheaper than padding/copying the HBM tensors in the wrapper).
        tr = m.shape[1]
        t = pl.program_id(1)
        row = lax.broadcasted_iota(jnp.int32, (tr, _LANES), 0)
        valid = (t * tr + row) < r0
        zero = f32(0.0)
        m = jnp.where(valid[None], m, zero)
        sp = jnp.where(valid[None], sp, zero)
        sg = jnp.where(valid[None], sg, zero)
        d = jnp.where(valid[None, None], d, zero)

    sp = sp * m                                             # masked score pred
    sg = sg * m                                             # masked score gt

    # Geo branch: gp*m - gg*m == (gp - gg) * m (one multiply).  Branch-free
    # smooth_l1 (beta=1): c = min(|x|, 1); sl1 = c * (|x| - 0.5 c).
    mb = m[:, None, :, :]                                   # hoisted broadcast
    dm = d * mb
    ad = jnp.abs(dm)
    cut = jnp.minimum(ad, f32(1.0))
    sl1 = cut * (ad - f32(0.5) * cut)
    geo_el = sl1 if binary_mask else sl1 * mb               # exact for 0/1 masks

    parts = jnp.concatenate(
        [_row_sum(sp * sg),      # intersection
         _row_sum(sp),           # sum(score_pred * m)
         _row_sum(sg),           # sum(score_gt * m)
         _row_sum(geo_el),       # sum(smooth_l1 [* m])
         _row_sum(m)],           # sum(m)
        axis=0)                                             # (5, 128)
    out_ref[...] = parts[None, None]                        # one lane-dense store


def _lane_fold(x, hw, r0):
    """(..., H, W) -> (..., r0, 128) by flattening the spatial axes."""
    x = x.reshape(x.shape[:-2] + (hw,))
    pad = r0 * _LANES - hw
    if pad:
        # TODO(synk): ragged H*W%128 still costs one pad copy; a fully
        # copy-free tail would need manual (pl.ANY + DMA) handling.
        x = jnp.pad(x, [(0, 0)] * (x.ndim - 1) + [(0, pad)])
    return x.reshape(x.shape[:-1] + (r0, _LANES))


@jax.jit
def east_loss(score_map_pred, geo_map_pred, score_map_gt, geo_map_gt,
              training_mask):
    b, h, w = score_map_pred.shape
    c = geo_map_pred.shape[1]
    hw = h * w
    r0 = _cdiv(hw, _LANES)

    mask = training_mask
    binary_mask = (mask.dtype == jnp.bool_)
    if binary_mask:
        mask = mask.astype(jnp.int8)        # stay 1 byte in HBM; kernel upcasts

    rows_target = _pick_rows_target(
        c, score_map_pred.dtype.itemsize, geo_map_pred.dtype.itemsize,
        mask.dtype.itemsize)
    bb, g, t, tr = _grid_config(b, r0, rows_target)
    mask_rows = (t * tr != r0)

    sp = _lane_fold(score_map_pred, hw, r0)     # (B, r0, 128)
    sg = _lane_fold(score_map_gt, hw, r0)       # (B, r0, 128)
    m = _lane_fold(mask, hw, r0)                # (B, r0, 128), narrow dtype
    gp = _lane_fold(geo_map_pred, hw, r0)       # (B, C, r0, 128)
    gg = _lane_fold(geo_map_gt, hw, r0)         # (B, C, r0, 128)

    kernel = functools.partial(_east_loss_kernel, r0=r0, mask_rows=mask_rows,
                               binary_mask=binary_mask)

    # (If VMEM-constrained on v5e one could add pipeline_mode=pl.Buffered(3)
    #  to the geo specs instead of growing the row tile.)
    partials = pl.pallas_call(
        kernel,
        out_shape=jax.ShapeDtypeStruct((g, t, 5, _LANES), jnp.float32),
        grid_spec=pltpu.PrefetchScalarGridSpec(
            num_scalar_prefetch=0,
            grid=(g, t),
            in_specs=[
                pl.BlockSpec((bb, tr, _LANES), lambda i, j: (i, j, 0)),        # score_pred
                pl.BlockSpec((bb, tr, _LANES), lambda i, j: (i, j, 0)),        # score_gt
                pl.BlockSpec((bb, c, tr, _LANES), lambda i, j: (i, 0, j, 0)),  # geo_pred
                pl.BlockSpec((bb, c, tr, _LANES), lambda i, j: (i, 0, j, 0)),  # geo_gt
                pl.BlockSpec((bb, tr, _LANES), lambda i, j: (i, j, 0)),        # mask
            ],
            out_specs=pl.BlockSpec((1, 1, 5, _LANES), lambda i, j: (i, j, 0, 0)),
        ),
        compiler_params=pltpu.CompilerParams(
            dimension_semantics=("parallel", "parallel"),
            vmem_limit_bytes=_VMEM_LIMIT_BYTES),
    )(sp, sg, gp, gg, m)

    # Tiny final reduction + scalar math in plain JAX.
    sums = jnp.sum(partials, axis=(0, 1, 3))                # (5,)
    inter, s_sp, s_sg, s_geo, s_m = sums
    eps = jnp.float32(1e-5)
    dice_loss = 1.0 - 2.0 * inter / (s_sp + s_sg + eps)
    geo_loss = s_geo / (s_m + eps)
    loss = dice_loss + 10.0 * geo_loss
    return loss, dice_loss, geo_loss


def east_loss_ref(score_map_pred, geo_map_pred, score_map_gt, geo_map_gt,
                  training_mask):
    """Pure-JAX reference, mirrors the PyTorch forward exactly."""
    m = training_mask.astype(jnp.float32)
    eps = 1e-5
    sp = score_map_pred.astype(jnp.float32) * m
    sg = score_map_gt.astype(jnp.float32) * m
    inter = jnp.sum(sp * sg)
    union = jnp.sum(sp) + jnp.sum(sg) + eps
    dice = 1.0 - 2.0 * inter / union
    gp = geo_map_pred.astype(jnp.float32) * m[:, None]
    gg = geo_map_gt.astype(jnp.float32) * m[:, None]
    d = gp - gg
    ad = jnp.abs(d)
    sl1 = jnp.where(ad < 1.0, 0.5 * d * d, ad - 0.5)
    geo = jnp.sum(sl1 * m[:, None]) / (jnp.sum(m) + eps)
    return dice + 10.0 * geo, dice, geo


if __name__ == "__main__":
    # EASTLoss has no learnable parameters; only inputs are needed.
    B, C, H, W = 2, 5, 16, 16
    key = jax.random.PRNGKey(0)
    k1, k2, k3, k4, k5 = jax.random.split(key, 5)

    score_map_pred = jax.nn.sigmoid(jax.random.normal(k1, (B, H, W), jnp.float32))
    score_map_gt = jax.random.bernoulli(k2, 0.5, (B, H, W)).astype(jnp.float32)
    geo_map_pred = jax.random.normal(k3, (B, C, H, W), jnp.float32) * 2.0
    geo_map_gt = jax.random.normal(k4, (B, C, H, W), jnp.float32) * 2.0
    training_mask = jax.random.bernoulli(k5, 0.7, (B, H, W))   # bool, native dtype

    out = east_loss(score_map_pred, geo_map_pred, score_map_gt, geo_map_gt,
                    training_mask)
    jax.block_until_ready(out)
    loss, dice_loss, geo_loss = out

    ref_loss, ref_dice, ref_geo = east_loss_ref(
        score_map_pred, geo_map_pred, score_map_gt, geo_map_gt, training_mask)

    assert jnp.allclose(loss, ref_loss, atol=1e-4, rtol=1e-4), (loss, ref_loss)
    assert jnp.allclose(dice_loss, ref_dice, atol=1e-5, rtol=1e-5), (dice_loss, ref_dice)
    assert jnp.allclose(geo_loss, ref_geo, atol=1e-5, rtol=1e-5), (geo_loss, ref_geo)

    # Second check: bf16 maps + f32 mask (exercises the in-kernel upcast path
    # and the general, non-binary-mask geo branch).
    sp16 = score_map_pred.astype(jnp.bfloat16)
    sg16 = score_map_gt.astype(jnp.bfloat16)
    gp16 = geo_map_pred.astype(jnp.bfloat16)
    gg16 = geo_map_gt.astype(jnp.bfloat16)
    mf = training_mask.astype(jnp.float32)
    out16 = east_loss(sp16, gp16, sg16, gg16, mf)
    jax.block_until_ready(out16)
    ref16 = east_loss_ref(sp16.astype(jnp.float32), gp16.astype(jnp.float32),
                          sg16.astype(jnp.float32), gg16.astype(jnp.float32), mf)
    assert jnp.allclose(out16[0], ref16[0], atol=1e-3, rtol=1e-3), (out16[0], ref16[0])
    assert jnp.allclose(out16[1], ref16[1], atol=1e-3, rtol=1e-3), (out16[1], ref16[1])
    assert jnp.allclose(out16[2], ref16[2], atol=1e-3, rtol=1e-3), (out16[2], ref16[2])

    print("KERNEL_OK")
</pallas_src>

<mosaic_0001>
module attributes {stable_mosaic.version = 11 : i64} {
  func.func @_east_loss_kernel(%arg0: i32, %arg1: i32, %arg2: memref<1x2x128xf32, #tpu.memory_space<vmem>>, %arg3: memref<1x2x128xf32, #tpu.memory_space<vmem>>, %arg4: memref<1x5x2x128xf32, #tpu.memory_space<vmem>>, %arg5: memref<1x5x2x128xf32, #tpu.memory_space<vmem>>, %arg6: memref<1x2x128xi8, #tpu.memory_space<vmem>>, %arg7: memref<1x1x5x128xf32, #tpu.memory_space<vmem>>) attributes {dimension_semantics = [#tpu.dimension_semantics<parallel>, #tpu.dimension_semantics<parallel>], iteration_bounds = array<i64: 2, 1>, scalar_prefetch = 0 : i64, scratch_operands = 0 : i64, tpu.core_type = #tpu.core_type<tc>, window_params = [{transform_indices = @transform_0, window_bounds = array<i64: 1, 2, 128>}, {transform_indices = @transform_1, window_bounds = array<i64: 1, 2, 128>}, {transform_indices = @transform_2, window_bounds = array<i64: 1, 5, 2, 128>}, {transform_indices = @transform_3, window_bounds = array<i64: 1, 5, 2, 128>}, {transform_indices = @transform_4, window_bounds = array<i64: 1, 2, 128>}, {transform_indices = @transform_5, window_bounds = array<i64: 1, 1, 5, 128>}]} {
    %c0 = arith.constant 0 : index
    %c0_0 = arith.constant 0 : index
    %c0_1 = arith.constant 0 : index
    %0 = vector.load %arg6[%c0, %c0_0, %c0_1] : memref<1x2x128xi8, #tpu.memory_space<vmem>>, vector<1x2x128xi8>
    %1 = arith.sitofp %0 : vector<1x2x128xi8> to vector<1x2x128xf32>
    %c0_2 = arith.constant 0 : index
    %c0_3 = arith.constant 0 : index
    %c0_4 = arith.constant 0 : index
    %2 = vector.load %arg2[%c0_2, %c0_3, %c0_4] : memref<1x2x128xf32, #tpu.memory_space<vmem>>, vector<1x2x128xf32>
    %c0_5 = arith.constant 0 : index
    %c0_6 = arith.constant 0 : index
    %c0_7 = arith.constant 0 : index
    %3 = vector.load %arg3[%c0_5, %c0_6, %c0_7] : memref<1x2x128xf32, #tpu.memory_space<vmem>>, vector<1x2x128xf32>
    %c0_8 = arith.constant 0 : index
    %c0_9 = arith.constant 0 : index
    %c0_10 = arith.constant 0 : index
    %c0_11 = arith.constant 0 : index
    %4 = vector.load %arg4[%c0_8, %c0_9, %c0_10, %c0_11] : memref<1x5x2x128xf32, #tpu.memory_space<vmem>>, vector<1x5x2x128xf32>
    %c0_12 = arith.constant 0 : index
    %c0_13 = arith.constant 0 : index
    %c0_14 = arith.constant 0 : index
    %c0_15 = arith.constant 0 : index
    %5 = vector.load %arg5[%c0_12, %c0_13, %c0_14, %c0_15] : memref<1x5x2x128xf32, #tpu.memory_space<vmem>>, vector<1x5x2x128xf32>
    %6 = arith.subf %4, %5 : vector<1x5x2x128xf32>
    %7 = arith.mulf %2, %1 : vector<1x2x128xf32>
    %8 = arith.mulf %3, %1 : vector<1x2x128xf32>
    %9 = vector.shape_cast %1 : vector<1x2x128xf32> to vector<1x1x2x128xf32>
    %10 = vector.broadcast %9 : vector<1x1x2x128xf32> to vector<1x5x2x128xf32>
    %11 = arith.mulf %6, %10 : vector<1x5x2x128xf32>
    %12 = math.absf %11 : vector<1x5x2x128xf32>
    %cst = arith.constant 1.000000e+00 : f32
    %13 = vector.broadcast %cst : f32 to vector<1x5x2x128xf32>
    %14 = arith.minimumf %12, %13 : vector<1x5x2x128xf32>
    %cst_16 = arith.constant 5.000000e-01 : f32
    %15 = vector.broadcast %cst_16 : f32 to vector<1x5x2x128xf32>
    %16 = arith.mulf %15, %14 : vector<1x5x2x128xf32>
    %17 = arith.subf %12, %16 : vector<1x5x2x128xf32>
    %18 = arith.mulf %14, %17 : vector<1x5x2x128xf32>
    %19 = arith.mulf %7, %8 : vector<1x2x128xf32>
    %cst_17 = arith.constant dense<0.000000e+00> : vector<2x128xf32>
    %20 = vector.multi_reduction <add>, %19, %cst_17 [0] : vector<1x2x128xf32> to vector<2x128xf32>
    %cst_18 = arith.constant dense<0.000000e+00> : vector<128xf32>
    %21 = vector.multi_reduction <add>, %20, %cst_18 [0] : vector<2x128xf32> to vector<128xf32>
    %22 = vector.shape_cast %21 : vector<128xf32> to vector<1x128xf32>
    %cst_19 = arith.constant dense<0.000000e+00> : vector<2x128xf32>
    %23 = vector.multi_reduction <add>, %7, %cst_19 [0] : vector<1x2x128xf32> to vector<2x128xf32>
    %cst_20 = arith.constant dense<0.000000e+00> : vector<128xf32>
    %24 = vector.multi_reduction <add>, %23, %cst_20 [0] : vector<2x128xf32> to vector<128xf32>
    %25 = vector.shape_cast %24 : vector<128xf32> to vector<1x128xf32>
    %cst_21 = arith.constant dense<0.000000e+00> : vector<2x128xf32>
    %26 = vector.multi_reduction <add>, %8, %cst_21 [0] : vector<1x2x128xf32> to vector<2x128xf32>
    %cst_22 = arith.constant dense<0.000000e+00> : vector<128xf32>
    %27 = vector.multi_reduction <add>, %26, %cst_22 [0] : vector<2x128xf32> to vector<128xf32>
    %28 = vector.shape_cast %27 : vector<128xf32> to vector<1x128xf32>
    %cst_23 = arith.constant dense<0.000000e+00> : vector<5x2x128xf32>
    %29 = vector.multi_reduction <add>, %18, %cst_23 [0] : vector<1x5x2x128xf32> to vector<5x2x128xf32>
    %cst_24 = arith.constant dense<0.000000e+00> : vector<2x128xf32>
    %30 = vector.multi_reduction <add>, %29, %cst_24 [0] : vector<5x2x128xf32> to vector<2x128xf32>
    %cst_25 = arith.constant dense<0.000000e+00> : vector<128xf32>
    %31 = vector.multi_reduction <add>, %30, %cst_25 [0] : vector<2x128xf32> to vector<128xf32>
    %32 = vector.shape_cast %31 : vector<128xf32> to vector<1x128xf32>
    %cst_26 = arith.constant dense<0.000000e+00> : vector<2x128xf32>
    %33 = vector.multi_reduction <add>, %1, %cst_26 [0] : vector<1x2x128xf32> to vector<2x128xf32>
    %cst_27 = arith.constant dense<0.000000e+00> : vector<128xf32>
    %34 = vector.multi_reduction <add>, %33, %cst_27 [0] : vector<2x128xf32> to vector<128xf32>
    %35 = vector.shape_cast %34 : vector<128xf32> to vector<1x128xf32>
    %36 = tpu.concatenate %22, %25, %28, %32, %35 in 0 : vector<1x128xf32>, vector<1x128xf32>, vector<1x128xf32>, vector<1x128xf32>, vector<1x128xf32> -> vector<5x128xf32>
    %37 = vector.shape_cast %36 : vector<5x128xf32> to vector<1x1x5x128xf32>
    %c0_28 = arith.constant 0 : index
    %c0_29 = arith.constant 0 : index
    %c0_30 = arith.constant 0 : index
    %c0_31 = arith.constant 0 : index
    %38 = vector.load %arg7[%c0_28, %c0_29, %c0_30, %c0_31] : memref<1x1x5x128xf32, #tpu.memory_space<vmem>>, vector<1x1x5x128xf32>
    tpu.vector_store %arg7[%c0_28, %c0_29, %c0_30, %c0_31], %37 {strides = array<i32>} : memref<1x1x5x128xf32, #tpu.memory_space<vmem>>, vector<1x1x5x128xf32>,
    return
  }
  func.func @transform_0(%arg0: i32, %arg1: i32) -> (i32, i32, i32) {
    %c0_i32 = arith.constant 0 : i32
    %c0_i32_0 = arith.constant 0 : i32
    return %arg0, %arg1, %c0_i32 : i32, i32, i32
  }
  func.func @transform_1(%arg0: i32, %arg1: i32) -> (i32, i32, i32) {
    %c0_i32 = arith.constant 0 : i32
    %c0_i32_0 = arith.constant 0 : i32
    return %arg0, %arg1, %c0_i32 : i32, i32, i32
  }
  func.func @transform_2(%arg0: i32, %arg1: i32) -> (i32, i32, i32, i32) {
    %c0_i32 = arith.constant 0 : i32
    %c0_i32_0 = arith.constant 0 : i32
    %c0_i32_1 = arith.constant 0 : i32
    return %arg0, %c0_i32, %arg1, %c0_i32_0 : i32, i32, i32, i32
  }
  func.func @transform_3(%arg0: i32, %arg1: i32) -> (i32, i32, i32, i32) {
    %c0_i32 = arith.constant 0 : i32
    %c0_i32_0 = arith.constant 0 : i32
    %c0_i32_1 = arith.constant 0 : i32
    return %arg0, %c0_i32, %arg1, %c0_i32_0 : i32, i32, i32, i32
  }
  func.func @transform_4(%arg0: i32, %arg1: i32) -> (i32, i32, i32) {
    %c0_i32 = arith.constant 0 : i32
    %c0_i32_0 = arith.constant 0 : i32
    return %arg0, %arg1, %c0_i32 : i32, i32, i32
  }
  func.func @transform_5(%arg0: i32, %arg1: i32) -> (i32, i32, i32, i32) {
    %c0_i32 = arith.constant 0 : i32
    %c0_i32_0 = arith.constant 0 : i32
    %c0_i32_1 = arith.constant 0 : i32
    return %arg0, %arg1, %c0_i32, %c0_i32_0 : i32, i32, i32, i32
  }
}

</mosaic_0001>

<bundles_post_ra>
// kernel: east_loss.1
= control target key start
LH: loop header
LB: loop body
LE: loop exit
PB: predicated region body
PF: predicated region fallthrough
CT: control target
= control target key end

     0   :  { %s709_s18 = smov 0   ;;  %s711_s19 = smov 0   ;;  %s771_s0 = inlined_call_operand.vmem [shape: f32[2,2,128], index: 0, kind: input, shape index: {}]   ;;  %s772_s1 = inlined_call_operand.vmem [shape: f32[2,2,128], index: 1, kind: input, shape index: {}]   ;;  %s773_s2 = inlined_call_operand.vmem [shape: f32[2,5,2,128], index: 2, kind: input, shape index: {}]   ;;  %s774_s3 = inlined_call_operand.vmem [shape: f32[2,5,2,128], index: 3, kind: input, shape index: {}]   ;;  %s775_s4 = inlined_call_operand.vmem [shape: s8[2,2,128], index: 4, kind: input, shape index: {}]   ;;  %s776_s5 = inlined_call_operand.vmem [shape: f32[2,1,5,128], index: 5, kind: output, shape index: {}]  }
   0x1   :  { %s713_s20 = smov 0  }
   0x2 LB: > { %s27_s21 = sadd.s32 1, %s673_s19  ;;  %p622_p0 = scmp.ge.s32.totalorder %s677_s20, 1  ;;  %s677_s20 = sphi %s713_s20, %s15_s20   ;;  %s673_s19 = sphi %s711_s19, %s778_s19   ;;  %s669_s18 = sphi %s709_s18, %s777_s18  }
   0x3   : > { %p29_p1 = scmp.ge.s32.totalorder %s27_s21, 2  ;;  %p262_p2 = scmp.lt.s32.totalorder %s677_s20, 3 }
   0x5   : > { %s780_s21 = smov (%p29_p1, %s27_s21), 0  ;;  %p263_p3 = pnand %p622_p0, %p262_p2 }
   0x6   : > { %p323_p4 = scmp.lt.s32.totalorder (!%p263_p3), %s669_s18, 1  ;;  %vm420_vm0 = vcmask (!%p263_p3), 1041408   ;;  %vm473_vm1 = vcmask (!%p263_p3), 1040384   ;;  %vm476_vm2 = vcmask (!%p263_p3), 1042432   ;;  %vm478_vm3 = vcmask (!%p263_p3), 1043456  }
   0x7   : > { %266 = sbr.rel (%p263_p3) target bundleno = 61 (0x3d), region = 40 }
   0xe   : > { %s782_s18 = smov (!%p323_p4, %s669_s18), 1 }
   0xf   : > { %s623_s22 = sshll.u32 %s782_s18, 1  ;;  %s630_s23 = smul.u32 10, %s782_s18 }
  0x10   : > { %s329_s26 = scalar_lea.vmem %s771_s0, %s623_s22  ;;  %s336_s29 = scalar_lea.vmem %s772_s1, %s623_s22 }
  0x11   : > { %s344_s7 = scalar_lea.vmem %s773_s2, %s630_s23  ;;  %s352_s10 = scalar_lea.vmem %s774_s3, %s630_s23  ;;  %v369_v3 = vld [vmem:[%s329_s26] sm:$0x3] }
  0x12   : > { %s358_s13 = scalar_lea.vmem %s775_s4, %s782_s18  ;;  %v371_v0 = vld [vmem:[%s344_s7] sm:$0x3]  ;;  %v372_v1 = vld [vmem:[%s344_s7 + $0x2] sm:$0x3]  ;;  %v373_v5 = vld [vmem:[%s344_s7 + $0x4] sm:$0x3] }
  0x13   : > { %v366_v2 = vld [vmem:[%s358_s13] sm:$0x1]  ;;  %v374_v6 = vld [vmem:[%s344_s7 + $0x6] sm:$0x3]  ;;  %v375_v8 = vld [vmem:[%s344_s7 + $0x8] sm:$0x3] }
  0x14   : > { %v370_v4 = vld [vmem:[%s336_s29] sm:$0x3]  ;;  %v367_v7 = vunpack.c.0.s8 %v366_v2  ;;  %v377_v10 = vld [vmem:[%s352_s10 + $0x2] sm:$0x3]  ;;  %v378_v11 = vld [vmem:[%s352_s10 + $0x4] sm:$0x3] }
  0x15   : > { %v376_v9 = vld [vmem:[%s352_s10] sm:$0x3]  ;;  %v379_v12 = vld [vmem:[%s352_s10 + $0x6] sm:$0x3]  ;;  %v380_v13 = vld [vmem:[%s352_s10 + $0x8] sm:$0x3]  ;;  %v382_v15 = vsub.f32 %v372_v1, %v377_v10  ;;  %v383_v17 = vsub.f32 %v373_v5, %v378_v11 }
  0x16   : > { %v381_v14 = vsub.f32 %v371_v0, %v376_v9  ;;  %v368_v16 = vcvt.s32.f32 %v367_v7  ;;  %v384_v18 = vsub.f32 %v374_v6, %v379_v12  ;;  %v385_v19 = vsub.f32 %v375_v8, %v380_v13  ;;  %s627_s14 = sshll.u32 %s782_s18, 3 }
  0x17   : > { %s365_s17 = scalar_lea.vmem %s776_s5, %s627_s14 }
  0x18   : > { %v386_v20 = vmul.f32 %v369_v3, %v368_v16  ;;  %v387_v21 = vmul.f32 %v370_v4, %v368_v16  ;;  %v388_v22 = vmul.f32 %v381_v14, %v368_v16  ;;  %v389_v23 = vmul.f32 %v382_v15, %v368_v16 }
  0x19   : > { %v390_v24 = vmul.f32 %v383_v17, %v368_v16  ;;  %v391_v25 = vmul.f32 %v384_v18, %v368_v16  ;;  %v392_v26 = vmul.f32 %v385_v19, %v368_v16  ;;  %v466_v58 = vsel %vm420_vm0, %v368_v16, 0.0 }
  0x1a   : > { %v393_v27 = vand.u32 2147483647, %v388_v22  ;;  %v394_v28 = vand.u32 2147483647, %v389_v23  ;;  %v418_v29 = vmul.f32 %v387_v21, %v386_v20  ;;  %v429_v30 = vsel %vm420_vm0, %v386_v20, 0.0 }
  0x1b   : > { %v395_v31 = vand.u32 2147483647, %v390_v24  ;;  %v396_v32 = vand.u32 2147483647, %v391_v25  ;;  %v397_v33 = vand.u32 2147483647, %v392_v26 }
  0x1c   : > { %v398_v34 = vmin.f32 %v393_v27, 1.0  ;;  %v399_v35 = vmin.f32 %v394_v28, 1.0  ;;  %v421_v36 = vsel %vm420_vm0, %v418_v29, 0.0  ;;  %v430_v37 = vrot.slane %v429_v30, 4 }
  0x1d   : > { %v400_v38 = vmin.f32 %v395_v31, 1.0  ;;  %v401_v39 = vmin.f32 %v396_v32, 1.0  ;;  %v402_v40 = vmin.f32 %v397_v33, 1.0  ;;  %v422_v41 = vrot.slane %v421_v36, 4 }
  0x1e   : > { %v403_v42 = vmul.f32 0.5, %v398_v34  ;;  %v404_v43 = vmul.f32 0.5, %v399_v35  ;;  %v437_v44 = vsel %vm420_vm0, %v387_v21, 0.0  ;;  %v431_v48 = vadd.f32 %v430_v37, %v429_v30 }
  0x1f   : > { %v405_v45 = vmul.f32 0.5, %v400_v38  ;;  %v406_v46 = vmul.f32 0.5, %v401_v39  ;;  %v407_v47 = vmul.f32 0.5, %v402_v40  ;;  %v423_v51 = vadd.f32 %v422_v41, %v421_v36 }
  0x20   : > { %v408_v49 = vsub.f32 %v393_v27, %v403_v42  ;;  %v409_v50 = vsub.f32 %v394_v28, %v404_v43  ;;  %v438_v52 = vrot.slane %v437_v44, 4  ;;  %v432_v61 = vrot.slane %v431_v48, 2 }
  0x21   : > { %v410_v53 = vsub.f32 %v395_v31, %v405_v45  ;;  %v411_v54 = vsub.f32 %v396_v32, %v406_v46  ;;  %v412_v55 = vsub.f32 %v397_v33, %v407_v47  ;;  %v424_v0 = vrot.slane %v423_v51, 2 }
  0x22   : > { %v413_v56 = vmul.f32 %v408_v49, %v398_v34  ;;  %v414_v57 = vmul.f32 %v409_v50, %v399_v35  ;;  %v439_v62 = vadd.f32 %v438_v52, %v437_v44  ;;  %v467_v6 = vrot.slane %v466_v58, 4 }
  0x23   : > { %v415_v59 = vmul.f32 %v410_v53, %v400_v38  ;;  %v416_v60 = vmul.f32 %v411_v54, %v401_v39  ;;  %v417_v63 = vmul.f32 %v412_v55, %v402_v40  ;;  %v425_v9 = vadd.f32 %v424_v0, %v423_v51 }
  0x24   : > { %v449_v1 = vsel %vm420_vm0, %v413_v56, 0.0  ;;  %v450_v2 = vsel %vm420_vm0, %v414_v57, 0.0  ;;  %v440_v7 = vrot.slane %v439_v62, 2  ;;  %v433_v10 = vadd.f32 %v432_v61, %v431_v48 }
  0x25   : > { %v451_v3 = vadd.f32 %v450_v2, %v449_v1  ;;  %v452_v4 = vsel %vm420_vm0, %v415_v59, 0.0  ;;  %v454_v5 = vsel %vm420_vm0, %v416_v60, 0.0  ;;  %v456_v11 = vsel %vm420_vm0, %v417_v63, 0.0 }
  0x26   : > { %v468_v12 = vadd.f32 %v467_v6, %v466_v58  ;;  %v441_v14 = vadd.f32 %v440_v7, %v439_v62  ;;  %v426_v17 = vrot.slane %v425_v9, 1  ;;  %v434_v18 = vrot.slane %v433_v10, 1 }
  0x27   : > { %v453_v8 = vadd.f32 %v452_v4, %v451_v3 }
  0x28   : > { %v469_v16 = vrot.slane %v468_v12, 2  ;;  %v442_v21 = vrot.slane %v441_v14, 1  ;;  %v427_v23 = vadd.f32 %v426_v17, %v425_v9  ;;  %v435_v24 = vadd.f32 %v434_v18, %v433_v10 }
  0x29   : > { %v455_v13 = vadd.f32 %v454_v5, %v453_v8 }
  0x2a   : > { %v470_v22 = vadd.f32 %v469_v16, %v468_v12  ;;  %v443_v27 = vadd.f32 %v442_v21, %v441_v14  ;;  %v474_v30 = vsel %vm473_vm1, %v427_v23, %v435_v24 }
  0x2b   : > { %v457_v15 = vadd.f32 %v456_v11, %v455_v13 }
  0x2c   : > { %v471_v28 = vrot.slane %v470_v22, 1  ;;  %v475_v33 = vsel %vm420_vm0, %v474_v30, %v443_v27 }
  0x2d   : > { %v458_v19 = vsel %vm420_vm0, %v457_v15, 0.0 }
  0x2e   : > { %v459_v20 = vrot.slane %v458_v19, 4  ;;  %v472_v32 = vadd.f32 %v471_v28, %v470_v22 }
  0x30   : > { %v460_v25 = vadd.f32 %v459_v20, %v458_v19 }
  0x32   : > { %v461_v26 = vrot.slane %v460_v25, 2 }
  0x34   : > { %v462_v29 = vadd.f32 %v461_v26, %v460_v25 }
  0x36   : > { %v463_v31 = vrot.slane %v462_v29, 1 }
  0x38   : > { %v464_v34 = vadd.f32 %v463_v31, %v462_v29 }
  0x3a   : > { %v477_v35 = vsel %vm476_vm2, %v475_v33, %v464_v34 }
  0x3b   : > { %v479_v36 = vsel %vm478_vm3, %v477_v35, %v472_v32 }
  0x3c   : > { %480 = vst [vmem:[%s365_s17] sm:$0x1f] %v479_v36 }
  0x3d PF: > { %s15_s20 = sadd.s32 1, %s677_s20   ;;  %s777_s18 = smov %s673_s19 }
  0x3e   : > { %p12_p5 = scmp.ge.s32.totalorder %s15_s20, 4   ;;  %s778_s19 = smov %s780_s21 }
  0x40   :  { %14 = sbr.rel (!%p12_p5) target bundleno = 2 (0x2), region = 82 }

</bundles_post_ra>
